<compile_context>
chip_gen: v7x
topology: tpu7x:2x2x1
jax: 0.10.0
libtpu: 0.0.40
codegen_flags: <defaults>
</compile_context>

<pallas_src>
import functools

import jax
import jax.numpy as jnp
from jax.experimental import pallas as pl
from jax.experimental.pallas import tpu as pltpu


def _round_up(n, m):
    return ((n + m - 1) // m) * m


def _pad_to(a, axis, target):
    pad = target - a.shape[axis]
    if pad == 0:
        return a
    widths = [(0, 0)] * a.ndim
    widths[axis] = (0, pad)
    return jnp.pad(a, widths)


def _elmo_output_kernel(x_ref, uw_ref, fw_ref, fb_ref, y_ref, *, n_valid):
    """One batch-block per grid step.

    x_ref : (Bt, Np, Dp) features
    uw_ref: (Yp, Dp) attention weights  (U.weight, zero-padded)
    fw_ref: (Yp, Dp) output weights     (final.weight, zero-padded)
    fb_ref: (1, Yp)  output bias        (final.bias, zero-padded)
    y_ref : (Bt, Yp) logits, lane-dense (padding sliced off by the caller)
    """
    Bt, Np, Dp = x_ref.shape
    Yp = uw_ref.shape[0]

    # Tile-aligned reshape (Np % 8 == 0, Dp % 128 == 0) -> a single 2-D slab.
    xf = x_ref[...].reshape(Bt * Np, Dp)
    uw = uw_ref[...]
    fw = fw_ref[...]

    # att[bn, l] = sum_d x[bn, d] * U[l, d]      (MXU, contraction over Dp)
    att = jax.lax.dot_general(
        xf, uw, dimension_numbers=(((1,), (1,)), ((), ())),
        preferred_element_type=jnp.float32)                      # (Bt*Np, Yp)
    # g[bn, l] = sum_d x[bn, d] * W[l, d]        (MXU, shares the xf operand)
    g = jax.lax.dot_general(
        xf, fw, dimension_numbers=(((1,), (1,)), ((), ())),
        preferred_element_type=jnp.float32)                      # (Bt*Np, Yp)

    att3 = att.reshape(Bt, Np, Yp)
    g3 = g.reshape(Bt, Np, Yp)

    # Mask padded sequence rows (static: only emitted if N was padded).
    if n_valid < Np:
        n_idx = jax.lax.broadcasted_iota(jnp.int32, (Bt, Np, Yp), 1)
        att3 = jnp.where(n_idx < n_valid, att3, -1e30)

    # softmax over the sequence axis (dim=2 in the PyTorch code).
    att_max = jnp.max(att3, axis=1, keepdims=True)
    e = jnp.exp(att3 - att_max)
    denom = jnp.sum(e, axis=1, keepdims=True)
    alpha = e * pl.reciprocal(denom, approx=True)                # (Bt, Np, Yp)

    # y[b, l] = sum_n alpha[b, n, l] * g[b, n, l] + bias[l]
    #         == (final.weight * (alpha @ x)).sum(-1) + final.bias
    y_ref[...] = jnp.sum(alpha * g3, axis=1) + fb_ref[...]


def elmo_output_layer(x, u_w, f_w, f_b, target, *, block_b=None):
    """x: (B, N, D) features; u_w/f_w: (Y, D); f_b: (Y,); target: (B, Y)."""
    B, N, D = x.shape
    Y = u_w.shape[0]

    LANE, SUB = 128, 8
    Dp = _round_up(D, LANE)   # contraction dim -> MXU / lane aligned
    Yp = _round_up(Y, LANE)   # label dim -> lane-dense output
    Np = _round_up(N, SUB)    # seq dim -> sublane aligned

    # Whole batch per grid step by default (tiny per-example work); for very
    # large B / real ELMo shapes set block_b (a multiple of 8) to tile the
    # batch and let the 'parallel' grid axis shard across TensorCores.
    Bt = B if block_b is None else max(1, min(block_b, B))
    grid_b = pl.cdiv(B, Bt)
    Bp = grid_b * Bt

    xp = _pad_to(_pad_to(_pad_to(x, 2, Dp), 1, Np), 0, Bp).astype(jnp.float32)
    uwp = _pad_to(_pad_to(u_w, 1, Dp), 0, Yp).astype(jnp.float32)
    fwp = _pad_to(_pad_to(f_w, 1, Dp), 0, Yp).astype(jnp.float32)
    fbp = _pad_to(f_b.reshape(1, Y), 1, Yp).astype(jnp.float32)

    kernel = functools.partial(_elmo_output_kernel, n_valid=N)

    y_pad = pl.pallas_call(
        kernel,
        out_shape=jax.ShapeDtypeStruct((Bp, Yp), jnp.float32),
        grid_spec=pltpu.PrefetchScalarGridSpec(
            num_scalar_prefetch=0,
            grid=(grid_b,),
            in_specs=[
                pl.BlockSpec((Bt, Np, Dp), lambda i: (i, 0, 0)),  # features
                pl.BlockSpec((Yp, Dp), lambda i: (0, 0)),          # U.weight
                pl.BlockSpec((Yp, Dp), lambda i: (0, 0)),          # final.weight
                pl.BlockSpec((1, Yp), lambda i: (0, 0)),           # final.bias
            ],
            out_specs=pl.BlockSpec((Bt, Yp), lambda i: (i, 0)),    # logits
        ),
        compiler_params=pltpu.CompilerParams(
            dimension_semantics=("parallel",)),
    )(xp, uwp, fwp, fbp)

    y = y_pad[:B, :Y]

    # BCEWithLogitsLoss(reduction='mean'), numerically-stable form, computed in
    # the wrapper (tiny O(B*Y) elementwise op, kept off the kernel path).
    t = target.astype(jnp.float32)
    loss = jnp.mean(jnp.maximum(y, 0.0) - y * t + jnp.log1p(jnp.exp(-jnp.abs(y))))
    return y, loss


def _reference(x, u_w, f_w, f_b, target):
    att = jnp.einsum("yd,bnd->byn", u_w, x)
    alpha = jax.nn.softmax(att, axis=2)
    m = jnp.einsum("byn,bnd->byd", alpha, x)
    y = jnp.sum(f_w[None] * m, axis=2) + f_b[None]
    t = target.astype(jnp.float32)
    loss = jnp.mean(jnp.maximum(y, 0.0) - y * t + jnp.log1p(jnp.exp(-jnp.abs(y))))
    return y, loss


if __name__ == "__main__":
    # Small shapes consistent with the forward pass.
    B, N = 2, 8                # batch, sequence length
    proj_dim = 16
    D = proj_dim * 2           # feature_size = projection_dim * 2
    Y = 16                     # number of labels
    vocab = 50

    key = jax.random.PRNGKey(0)
    k_emb, k_ids, k_u, k_f, k_b, k_t = jax.random.split(key, 6)

    # TODO(synk): real pretrained ELMo biLM (options/weight files) is not
    # reproducible in-script; a deterministic synthetic embedding stands in for
    # elmo_representations[0].  nn.Dropout is identity at inference time.
    text_inputs = jax.random.randint(k_ids, (B, N), 0, vocab)
    emb_table = jax.random.normal(k_emb, (vocab, D), dtype=jnp.float32) * 0.1
    features = emb_table[text_inputs]                      # (B, N, D)

    # OutputLayer parameters (xavier_uniform for weights, PyTorch default bias init).
    xav = (6.0 / (D + Y)) ** 0.5
    u_w = jax.random.uniform(k_u, (Y, D), jnp.float32, -xav, xav)
    f_w = jax.random.uniform(k_f, (Y, D), jnp.float32, -xav, xav)
    b_bound = 1.0 / (D ** 0.5)
    f_b = jax.random.uniform(k_b, (Y,), jnp.float32, -b_bound, b_bound)

    target = jax.random.bernoulli(k_t, 0.3, (B, Y)).astype(jnp.float32)

    y, loss = elmo_output_layer(features, u_w, f_w, f_b, target)
    jax.block_until_ready((y, loss))

    y_ref, loss_ref = _reference(features, u_w, f_w, f_b, target)
    assert jnp.allclose(y, y_ref, rtol=2e-3, atol=2e-3), "logits mismatch"
    assert jnp.allclose(loss, loss_ref, rtol=2e-3, atol=2e-3), "loss mismatch"

    print("KERNEL_OK")
</pallas_src>

<mosaic_0001>
module attributes {stable_mosaic.version = 11 : i64} {
  func.func @_elmo_output_kernel(%arg0: i32, %arg1: memref<2x8x128xf32, #tpu.memory_space<vmem>>, %arg2: memref<128x128xf32, #tpu.memory_space<vmem>>, %arg3: memref<128x128xf32, #tpu.memory_space<vmem>>, %arg4: memref<1x128xf32, #tpu.memory_space<vmem>>, %arg5: memref<2x128xf32, #tpu.memory_space<vmem>>) attributes {dimension_semantics = [#tpu.dimension_semantics<parallel>], iteration_bounds = array<i64: 1>, scalar_prefetch = 0 : i64, scratch_operands = 0 : i64, tpu.core_type = #tpu.core_type<tc>, window_params = [{transform_indices = @transform_0, window_bounds = array<i64: 2, 8, 128>}, {pipeline_mode = #tpu.pipeline_mode<synchronous>, transform_indices = @transform_1, window_bounds = array<i64: 128, 128>}, {pipeline_mode = #tpu.pipeline_mode<synchronous>, transform_indices = @transform_2, window_bounds = array<i64: 128, 128>}, {pipeline_mode = #tpu.pipeline_mode<synchronous>, transform_indices = @transform_3, window_bounds = array<i64: 1, 128>}, {transform_indices = @transform_4, window_bounds = array<i64: 2, 128>}]} {
    %c0 = arith.constant 0 : index
    %c0_0 = arith.constant 0 : index
    %c0_1 = arith.constant 0 : index
    %0 = vector.load %arg1[%c0, %c0_0, %c0_1] : memref<2x8x128xf32, #tpu.memory_space<vmem>>, vector<2x8x128xf32>
    %1 = vector.shape_cast %0 : vector<2x8x128xf32> to vector<16x128xf32>
    %c0_2 = arith.constant 0 : index
    %c0_3 = arith.constant 0 : index
    %2 = vector.load %arg2[%c0_2, %c0_3] : memref<128x128xf32, #tpu.memory_space<vmem>>, vector<128x128xf32>
    %c0_4 = arith.constant 0 : index
    %c0_5 = arith.constant 0 : index
    %3 = vector.load %arg3[%c0_4, %c0_5] : memref<128x128xf32, #tpu.memory_space<vmem>>, vector<128x128xf32>
    %cst = arith.constant dense<0.000000e+00> : vector<16x128xf32>
    %4 = tpu.matmul %1, %2, %cst {dimension_numbers = #tpu.dot_dimension_numbers<[1], [1], [0], [0], [0, 0, 1, 0], [], []>} : vector<16x128xf32>, vector<128x128xf32>, vector<16x128xf32> -> vector<16x128xf32>
    %cst_6 = arith.constant dense<0.000000e+00> : vector<16x128xf32>
    %5 = tpu.matmul %1, %3, %cst_6 {dimension_numbers = #tpu.dot_dimension_numbers<[1], [1], [0], [0], [0, 0, 1, 0], [], []>} : vector<16x128xf32>, vector<128x128xf32>, vector<16x128xf32> -> vector<16x128xf32>
    %6 = vector.shape_cast %4 : vector<16x128xf32> to vector<2x8x128xf32>
    %7 = vector.shape_cast %5 : vector<16x128xf32> to vector<2x8x128xf32>
    %cst_7 = arith.constant dense<0xFF800000> : vector<2x128xf32>
    %8 = vector.multi_reduction <maximumf>, %6, %cst_7 [1] : vector<2x8x128xf32> to vector<2x128xf32>
    %9 = vector.shape_cast %8 : vector<2x128xf32> to vector<2x1x128xf32>
    %10 = vector.broadcast %9 : vector<2x1x128xf32> to vector<2x8x128xf32>
    %11 = arith.subf %6, %10 : vector<2x8x128xf32>
    %12 = math.exp %11 : vector<2x8x128xf32>
    %cst_8 = arith.constant dense<0.000000e+00> : vector<2x128xf32>
    %13 = vector.multi_reduction <add>, %12, %cst_8 [1] : vector<2x8x128xf32> to vector<2x128xf32>
    %14 = vector.shape_cast %13 : vector<2x128xf32> to vector<2x1x128xf32>
    %15 = tpu.reciprocal %14 {approx = true} : vector<2x1x128xf32> -> vector<2x1x128xf32>
    %16 = vector.broadcast %15 : vector<2x1x128xf32> to vector<2x8x128xf32>
    %17 = arith.mulf %12, %16 : vector<2x8x128xf32>
    %18 = arith.mulf %17, %7 : vector<2x8x128xf32>
    %cst_9 = arith.constant dense<0.000000e+00> : vector<2x128xf32>
    %19 = vector.multi_reduction <add>, %18, %cst_9 [1] : vector<2x8x128xf32> to vector<2x128xf32>
    %c0_10 = arith.constant 0 : index
    %c0_11 = arith.constant 0 : index
    %20 = vector.load %arg4[%c0_10, %c0_11] : memref<1x128xf32, #tpu.memory_space<vmem>>, vector<1x128xf32>
    %21 = vector.broadcast %20 : vector<1x128xf32> to vector<2x128xf32>
    %22 = arith.addf %19, %21 : vector<2x128xf32>
    %c0_12 = arith.constant 0 : index
    %c0_13 = arith.constant 0 : index
    %23 = vector.load %arg5[%c0_12, %c0_13] : memref<2x128xf32, #tpu.memory_space<vmem>>, vector<2x128xf32>
    tpu.vector_store %arg5[%c0_12, %c0_13], %22 {strides = array<i32>} : memref<2x128xf32, #tpu.memory_space<vmem>>, vector<2x128xf32>,
    return
  }
  func.func @transform_0(%arg0: i32) -> (i32, i32, i32) {
    %c0_i32 = arith.constant 0 : i32
    %c0_i32_0 = arith.constant 0 : i32
    %c0_i32_1 = arith.constant 0 : i32
    return %arg0, %c0_i32, %c0_i32_0 : i32, i32, i32
  }
  func.func @transform_1(%arg0: i32) -> (i32, i32) {
    %c0_i32 = arith.constant 0 : i32
    %c0_i32_0 = arith.constant 0 : i32
    %c0_i32_1 = arith.constant 0 : i32
    return %c0_i32, %c0_i32_0 : i32, i32
  }
  func.func @transform_2(%arg0: i32) -> (i32, i32) {
    %c0_i32 = arith.constant 0 : i32
    %c0_i32_0 = arith.constant 0 : i32
    %c0_i32_1 = arith.constant 0 : i32
    return %c0_i32, %c0_i32_0 : i32, i32
  }
  func.func @transform_3(%arg0: i32) -> (i32, i32) {
    %c0_i32 = arith.constant 0 : i32
    %c0_i32_0 = arith.constant 0 : i32
    %c0_i32_1 = arith.constant 0 : i32
    return %c0_i32, %c0_i32_0 : i32, i32
  }
  func.func @transform_4(%arg0: i32) -> (i32, i32) {
    %c0_i32 = arith.constant 0 : i32
    %c0_i32_0 = arith.constant 0 : i32
    return %arg0, %c0_i32 : i32, i32
  }
}

</mosaic_0001>

<bundles_post_ra>
// kernel: tpu_custom_call.1
= control target key start
LH: loop header
LB: loop body
LE: loop exit
PB: predicated region body
PF: predicated region fallthrough
CT: control target
= control target key end

     0   :  { %9 = vsyncpa [#allocation3], 0  ;;  %s700_s0 = inlined_call_operand.hbm [shape: f32[2,8,128], index: 0, kind: input, shape index: {}]   ;;  %s701_s1 = inlined_call_operand.hbm [shape: f32[128,128], index: 1, kind: input, shape index: {}]   ;;  %s702_s2 = inlined_call_operand.hbm [shape: f32[128,128], index: 2, kind: input, shape index: {}]   ;;  %s703_s3 = inlined_call_operand.vmem [shape: f32[1,128], index: 3, kind: input, shape index: {}]   ;;  %s704_s4 = inlined_call_operand.hbm [shape: f32[2,128], index: 4, kind: output, shape index: {}]  }
   0x1   :  { %10 = vsyncpa [#allocation6], 0 }
   0x2   :  { %11 = vsyncpa [#allocation4], 0  ;;  %s602_s15 = smov [#allocation5]   ;;  %s603_s17 = smov [#allocation2]  }
   0x3   :  { %s29_s16 = sshll.u32 %s602_s15, 4  ;;  %s17_s18 = sshll.u32 %s603_s17, 4  ;;  %s30_s16 = int_to_ptr.vmem [resolvable:$true] %s29_s16  ;;  %s633_s18 = int_to_ptr.vmem [resolvable:$true] %s17_s18 }
   0x4   :  { %s508_s21 = scalar_lea.hbm %s701_s1, 2048 }
   0x5   :  { %p509_p0 = scmp.ne.s32.totalorder %s701_s1, %s508_s21  ;;  %p512_p1 = scmp.lt.u32.totalorder %s508_s21, %s701_s1 }
   0x7   :  { %p514_p2 = pnand %p512_p1, %p509_p0 }
   0x9   :  { %517 = shalt.err (!%p514_p2)
}
   0xa   :  { %s518_s26 = scalar_lea.vmem %s30_s16, 2048  ;;  %p523_p4 = scmp.lt.s32.totalorder %s30_s16, %s30_s16 }
   0xb   :  { %p519_p3 = scmp.ne.s32.totalorder %s30_s16, %s518_s26  ;;  %p524_p5 = scmp.lt.s32.totalorder %s518_s26, %s518_s26 }
   0xd   :  { %p525_p6 = por %p524_p5, %p523_p4 }
   0xf   :  { %p526_p7 = pnand %p525_p6, %p519_p3 }
  0x11   :  { %529 = shalt.err (!%p526_p7)
}
  0x12   :  { %s604_s27 = smov 128   ;;  %s605_s28 = smov 8  }
  0x13   :  { %35 = dma.hbm_to_vmem [thread:$0]  %s701_s1, 2048, %s30_s16, [#allocation6], %s604_s27, %s604_s27, %s605_s28  }
  0x14   :  { %s530_s7 = scalar_lea.hbm %s700_s0, 256 }
  0x15   :  { %p531_p8 = scmp.ne.s32.totalorder %s700_s0, %s530_s7  ;;  %p534_p9 = scmp.lt.u32.totalorder %s530_s7, %s700_s0 }
  0x17   :  { %p536_p10 = pnand %p534_p9, %p531_p8 }
  0x19   :  { %539 = shalt.err (!%p536_p10)
}
  0x1a   :  { %s540_s12 = scalar_lea.vmem %s633_s18, 256  ;;  %p545_p12 = scmp.lt.s32.totalorder %s633_s18, %s633_s18 }
  0x1b   :  { %p541_p11 = scmp.ne.s32.totalorder %s633_s18, %s540_s12  ;;  %p546_p13 = scmp.lt.s32.totalorder %s540_s12, %s540_s12 }
  0x1d   :  { %p547_p0 = por %p546_p13, %p545_p12 }
  0x1f   :  { %p548_p1 = pnand %p547_p0, %p541_p11 }
  0x21   :  { %551 = shalt.err (!%p548_p1)
}
  0x22   :  { %23 = dma.hbm_to_vmem [thread:$0]  %s700_s0, 256, %s633_s18, [#allocation3], %s604_s27, %s604_s27, %s605_s28  }
  0x23   :  { %s606_s14 = smov [#allocation7]   ;;  %s552_s19 = scalar_lea.hbm %s702_s2, 2048 }
  0x24   :  { %s41_s15 = sshll.u32 %s606_s14, 4  ;;  %p553_p2 = scmp.ne.s32.totalorder %s702_s2, %s552_s19  ;;  %s42_s15 = int_to_ptr.vmem [resolvable:$true] %s41_s15 }
  0x25   :  { %p556_p3 = scmp.lt.u32.totalorder %s552_s19, %s702_s2 }
  0x27   :  { %p558_p4 = pnand %p556_p3, %p553_p2 }
  0x29   :  { %561 = shalt.err (!%p558_p4)
}
  0x2a   :  { %s562_s24 = scalar_lea.vmem %s42_s15, 2048  ;;  %p567_p6 = scmp.lt.s32.totalorder %s42_s15, %s42_s15 }
  0x2b   :  { %p563_p5 = scmp.ne.s32.totalorder %s42_s15, %s562_s24  ;;  %p568_p7 = scmp.lt.s32.totalorder %s562_s24, %s562_s24 }
  0x2d   :  { %p569_p8 = por %p568_p7, %p567_p6 }
  0x2f   :  { %p570_p9 = pnand %p569_p8, %p563_p5 }
  0x31   :  { %573 = shalt.err (!%p570_p9)
}
  0x32   :  { %47 = dma.hbm_to_vmem [thread:$0]  %s702_s2, 2048, %s42_s15, [#allocation6], %s604_s27, %s604_s27, %s605_s28  }
  0x33   :  { %596 = dma.done.wait [#allocation3], 256  }
  0x34   :  { %597 = vsyncadd [#allocation3], 4294967040 }
  0x35   :  { %598 = dma.done.wait [#allocation6], 4096  }
  0x36   :  { %599 = vsyncadd [#allocation6], 4294963200  ;;  %v61_v0 = vld [vmem:[#allocation5] sm:$0xff]  ;;  %v62_v1 = vld [vmem:[#allocation5 + $0x8] sm:$0xff]  ;;  %s607_s26 = smov [#allocation8]   ;;  %vm303_vm0 = vcmask 1041409  }
  0x37   :  { %v63_v2 = vld [vmem:[#allocation5 + $0x10] sm:$0xff]  ;;  %v430_v3 = vpack.c.bf16 %v62_v1, %v61_v0  ;;  %v64_v4 = vld [vmem:[#allocation5 + $0x18] sm:$0xff]  ;;  %v77_v6 = vld [vmem:[#allocation7] sm:$0xff]  ;;  %s313_s27 = sshll.u32 %s607_s26, 4  ;;  %s314_s27 = int_to_ptr.vmem [resolvable:$true] %s313_s27 }
  0x38   :  { %v434_v5 = vpack.c.bf16 %v64_v4, %v63_v2  ;;  %v65_v7 = vld [vmem:[#allocation5 + $0x20] sm:$0xff]  ;;  %v66_v8 = vld [vmem:[#allocation5 + $0x28] sm:$0xff]  ;;  %v79_v11 = vld [vmem:[#allocation7 + $0x10] sm:$0xff]  ;;  %s574_s28 = scalar_lea.vmem %s314_s27, 32  ;;  %p579_p11 = scmp.lt.s32.totalorder %s314_s27, %s314_s27 }
  0x39   :  { %431 = vmatprep.subr.bf16.mxu0 %v430_v3  ;;  %v78_v9 = vld [vmem:[#allocation7 + $0x8] sm:$0xff]  ;;  %v80_v12 = vld [vmem:[#allocation7 + $0x18] sm:$0xff]  ;;  %v59_v13 = vld [vmem:[#allocation2] sm:$0xff]  ;;  %v438_v15 = vpack.c.bf16 %v66_v8, %v65_v7  ;;  %p575_p10 = scmp.ne.s32.totalorder %s314_s27, %s574_s28  ;;  %p580_p12 = scmp.lt.s32.totalorder %s574_s28, %s574_s28 }
  0x3a   :  { %433 = vmatpush3.bf16.xpose.msra.mxu0 %v430_v3  ;;  %v462_v10 = vpack.c.bf16 %v78_v9, %v77_v6  ;;  %v466_v14 = vpack.c.bf16 %v80_v12, %v79_v11  ;;  %392 = vmatprep.mubr.f32.mxu0 %v59_v13  ;;  %v81_v16 = vld [vmem:[#allocation7 + $0x20] sm:$0xff]  ;;  %v82_v17 = vld [vmem:[#allocation7 + $0x28] sm:$0xff]  ;;  %v67_v18 = vld [vmem:[#allocation5 + $0x30] sm:$0xff] }
  0x3b   :  { %435 = vmatprep.subr.bf16.mxu0 %v434_v5  ;;  %427 = vmatprep.mubr.f32.mxu1 %v59_v13  ;;  %v68_v19 = vld [vmem:[#allocation5 + $0x38] sm:$0xff]  ;;  %v470_v20 = vpack.c.bf16 %v82_v17, %v81_v16  ;;  %v83_v22 = vld [vmem:[#allocation7 + $0x30] sm:$0xff]  ;;  %v69_v24 = vld [vmem:[#allocation5 + $0x40] sm:$0xff]  ;;  %p581_p13 = por %p580_p12, %p579_p11 }
  0x3c   :  { %463 = vmatprep.subr.bf16.mxu1 %v462_v10  ;;  %v442_v21 = vpack.c.bf16 %v68_v19, %v67_v18  ;;  %v84_v23 = vld [vmem:[#allocation7 + $0x38] sm:$0xff]  ;;  %v70_v25 = vld [vmem:[#allocation5 + $0x48] sm:$0xff]  ;;  %v85_v28 = vld [vmem:[#allocation7 + $0x40] sm:$0xff] }
  0x3d   :  { %465 = vmatpush3.bf16.xpose.msra.mxu1 %v462_v10  ;;  %v474_v26 = vpack.c.bf16 %v84_v23, %v83_v22  ;;  %v446_v27 = vpack.c.bf16 %v70_v25, %v69_v24  ;;  %v86_v29 = vld [vmem:[#allocation7 + $0x48] sm:$0xff]  ;;  %v71_v30 = vld [vmem:[#allocation5 + $0x50] sm:$0xff]  ;;  %v72_v31 = vld [vmem:[#allocation5 + $0x58] sm:$0xff]  ;;  %p582_p0 = pnand %p581_p13, %p575_p10 }
  0x3e   :  { %467 = vmatprep.subr.bf16.mxu1 %v466_v14  ;;  %v478_v32 = vpack.c.bf16 %v86_v29, %v85_v28  ;;  %v450_v33 = vpack.c.bf16 %v72_v31, %v71_v30  ;;  %v87_v34 = vld [vmem:[#allocation7 + $0x50] sm:$0xff]  ;;  %v88_v35 = vld [vmem:[#allocation7 + $0x58] sm:$0xff]  ;;  %v73_v36 = vld [vmem:[#allocation5 + $0x60] sm:$0xff] }
  0x3f   :  { %v74_v37 = vld [vmem:[#allocation5 + $0x68] sm:$0xff]  ;;  %v482_v38 = vpack.c.bf16 %v88_v35, %v87_v34  ;;  %v89_v40 = vld [vmem:[#allocation7 + $0x60] sm:$0xff]  ;;  %v75_v42 = vld [vmem:[#allocation5 + $0x70] sm:$0xff] }
  0x40   :  { %v454_v39 = vpack.c.bf16 %v74_v37, %v73_v36  ;;  %v90_v41 = vld [vmem:[#allocation7 + $0x68] sm:$0xff]  ;;  %v76_v43 = vld [vmem:[#allocation5 + $0x78] sm:$0xff]  ;;  %v91_v46 = vld [vmem:[#allocation7 + $0x70] sm:$0xff] }
  0x41   :  { %v486_v44 = vpack.c.bf16 %v90_v41, %v89_v40  ;;  %v458_v45 = vpack.c.bf16 %v76_v43, %v75_v42  ;;  %v92_v47 = vld [vmem:[#allocation7 + $0x78] sm:$0xff]  ;;  %v323_v36 = vld [vmem:[%s703_s3] ss:$0 sm:$0xff] }
  0x42   :  { %437 = vmatpush3.bf16.xpose.msra.mxu0 %v434_v5  ;;  %v490_v48 = vpack.c.bf16 %v92_v47, %v91_v46  ;;  %v60_v49 = vld [vmem:[#allocation2 + $0x8] sm:$0xff] }
  0x43   :  { %439 = vmatprep.subr.bf16.mxu0 %v438_v15 }
  0x45   :  { %469 = vmatpush3.bf16.xpose.msra.mxu1 %v466_v14 }
  0x46   :  { %471 = vmatprep.subr.bf16.mxu1 %v470_v20 }
  0x4a   :  { %441 = vmatpush3.bf16.xpose.msra.mxu0 %v438_v15 }
  0x4b   :  { %443 = vmatprep.subr.bf16.mxu0 %v442_v21 }
  0x4d   :  { %473 = vmatpush3.bf16.xpose.msra.mxu1 %v470_v20 }
  0x4e   :  { %475 = vmatprep.subr.bf16.mxu1 %v474_v26 }
  0x52   :  { %445 = vmatpush3.bf16.xpose.msra.mxu0 %v442_v21 }
  0x53   :  { %447 = vmatprep.subr.bf16.mxu0 %v446_v27 }
  0x55   :  { %477 = vmatpush3.bf16.xpose.msra.mxu1 %v474_v26 }
  0x56   :  { %479 = vmatprep.subr.bf16.mxu1 %v478_v32 }
  0x5a   :  { %449 = vmatpush3.bf16.xpose.msra.mxu0 %v446_v27 }
  0x5b   :  { %451 = vmatprep.subr.bf16.mxu0 %v450_v33 }
  0x5d   :  { %481 = vmatpush3.bf16.xpose.msra.mxu1 %v478_v32 }
  0x5e   :  { %483 = vmatprep.subr.bf16.mxu1 %v482_v38 }
  0x62   :  { %453 = vmatpush3.bf16.xpose.msra.mxu0 %v450_v33 }
  0x63   :  { %455 = vmatprep.subr.bf16.mxu0 %v454_v39 }
  0x65   :  { %485 = vmatpush3.bf16.xpose.msra.mxu1 %v482_v38 }
  0x66   :  { %487 = vmatprep.subr.bf16.mxu1 %v486_v44 }
  0x6a   :  { %457 = vmatpush3.bf16.xpose.msra.mxu0 %v454_v39 }
  0x6b   :  { %459 = vmatprep.subr.bf16.mxu0 %v458_v45 }
  0x6d   :  { %489 = vmatpush3.bf16.xpose.msra.mxu1 %v486_v44 }
  0x6e   :  { %491 = vmatprep.subr.bf16.mxu1 %v490_v48 }
  0x72   :  { %461 = vmatpush3.bf16.xpose.msra.mxu0 %v458_v45 }
  0x75   :  { %493 = vmatpush3.bf16.xpose.msra.mxu1 %v490_v48 }
  0x79   :  { %393 = vmatmul.mubr.f32.vlgmr.msra.gmra.mrb[0].mxu0 %v60_v49 }
  0x7c   :  { %428 = vmatmul.mubr.f32.vlgmr.msra.gmra.mrb[0].mxu1 %v60_v49 }
 0x14c   :  { %v394_v50 = vpop.f32.mrb[0].mxu0 }
 0x14d   :  { %v249_v51 = vrot.slane %v394_v50, 4  ;;  %v159_v52 = vpop.f32.mrb[1].mxu0 }
 0x14e   :  { %v243_v53 = vrot.slane %v159_v52, 4 }
 0x14f   :  { %v250_v54 = vmax.f32 %v394_v50, %v249_v51  ;;  %v429_v57 = vpop.f32.mrb[0].mxu1 }
 0x150   :  { %v244_v55 = vmax.f32 %v159_v52, %v243_v53  ;;  %v234_v59 = vpop.f32.mrb[1].mxu1 }
 0x151   :  { %v251_v56 = vrot.slane %v250_v54, 2 }
 0x152   :  { %v245_v58 = vrot.slane %v244_v55, 2 }
 0x153   :  { %v252_v60 = vmax.f32 %v250_v54, %v251_v56 }
 0x154   :  { %v246_v61 = vmax.f32 %v244_v55, %v245_v58 }
 0x155   :  { %v253_v62 = vrot.slane %v252_v60, 1 }
 0x156   :  { %v247_v63 = vrot.slane %v246_v61, 1 }
 0x157   :  { %v254_v0 = vmax.f32 %v252_v60, %v253_v62 }
 0x158   :  { %v248_v1 = vmax.f32 %v246_v61, %v247_v63 }
 0x159   :  { %v256_v2 = vsub.f32 %v394_v50, %v254_v0 }
 0x15a   :  { %v255_v3 = vsub.f32 %v159_v52, %v248_v1 }
 0x15b   :  { %v259_v4 = vmul.f32 1.442695, %v256_v2 }
 0x15c   :  { %v257_v5 = vmul.f32 1.442695, %v255_v3 }
 0x15d   :  { %500 = vpow2.f32 %v259_v4 }
 0x15e   :  { %502 = vpow2.f32 %v257_v5 }
 0x167   :  { %v501_v6 = vpop.eup %500 }
 0x168   :  { %v503_v7 = vpop.eup %502  ;;  %v267_v8 = vrot.slane %v501_v6, 4 }
 0x169   :  { %v261_v9 = vrot.slane %v503_v7, 4 }
 0x16a   :  { %v268_v10 = vadd.f32 %v501_v6, %v267_v8 }
 0x16b   :  { %v262_v11 = vadd.f32 %v503_v7, %v261_v9 }
 0x16c   :  { %v269_v12 = vrot.slane %v268_v10, 2 }
 0x16d   :  { %v263_v13 = vrot.slane %v262_v11, 2 }
 0x16e   :  { %v270_v14 = vadd.f32 %v269_v12, %v268_v10 }
 0x16f   :  { %v264_v15 = vadd.f32 %v263_v13, %v262_v11 }
 0x170   :  { %v271_v16 = vrot.slane %v270_v14, 1 }
 0x171   :  { %v265_v17 = vrot.slane %v264_v15, 1 }
 0x172   :  { %v272_v18 = vadd.f32 %v271_v16, %v270_v14 }
 0x173   :  { %v266_v19 = vadd.f32 %v265_v17, %v264_v15 }
 0x174   :  { %504 = vrcp.f32 %v272_v18 }
 0x175   :  { %506 = vrcp.f32 %v266_v19 }
 0x17e   :  { %v505_v20 = vpop.eup %504 }
 0x17f   :  { %v507_v21 = vpop.eup %506  ;;  %v276_v22 = vmul.f32 %v505_v20, %v501_v6 }
 0x180   :  { %v275_v23 = vmul.f32 %v507_v21, %v503_v7 }
 0x181   :  { %v278_v24 = vmul.f32 %v429_v57, %v276_v22 }
 0x182   :  { %v277_v25 = vmul.f32 %v275_v23, %v234_v59 }
 0x183   :  { %v285_v26 = vrot.slane %v278_v24, 4 }
 0x184   :  { %v279_v27 = vrot.slane %v277_v25, 4 }
 0x185   :  { %v286_v28 = vadd.f32 %v285_v26, %v278_v24 }
 0x186   :  { %v280_v29 = vadd.f32 %v279_v27, %v277_v25 }
 0x187   :  { %v287_v30 = vrot.slane %v286_v28, 2 }
 0x188   :  { %v281_v31 = vrot.slane %v280_v29, 2 }
 0x189   :  { %v288_v32 = vadd.f32 %v287_v30, %v286_v28 }
 0x18a   :  { %v282_v33 = vadd.f32 %v281_v31, %v280_v29 }
 0x18b   :  { %v289_v34 = vrot.slane %v288_v32, 1 }
 0x18c   :  { %v283_v35 = vrot.slane %v282_v33, 1 }
 0x18d   :  { %v290_v37 = vadd.f32 %v289_v34, %v288_v32 }
 0x18e   :  { %v284_v38 = vadd.f32 %v283_v35, %v282_v33 }
 0x18f   :  { %v299_v39 = vadd.f32 %v323_v36, %v290_v37 }
 0x190   :  { %v298_v40 = vadd.f32 %v323_v36, %v284_v38 }
 0x191   :  { %v302_v41 = vrot.slane %v299_v39, 7 }
 0x193   :  { %v304_v42 = vsel %vm303_vm0, %v302_v41, %v298_v40 }
 0x194   :  { %306 = vst [vmem:[#allocation8] sm:$0x3] %v304_v42 }
 0x195   :  { %585 = shalt.err (!%p582_p0)
}
 0x196   :  { %s586_s30 = scalar_lea.hbm %s704_s4, 32 }
 0x197   :  { %p587_p1 = scmp.ne.s32.totalorder %s704_s4, %s586_s30  ;;  %p590_p2 = scmp.lt.u32.totalorder %s586_s30, %s704_s4 }
 0x199   :  { %p592_p3 = pnand %p590_p2, %p587_p1 }
 0x19b   :  { %595 = shalt.err (!%p592_p3)
}
 0x19c   :  { %316 = dma.vmem_to_hbm [thread:$0]  %s314_s27, 32, %s704_s4, [#allocation4]  }
 0x19d   :  { %600 = dma.done.wait [#allocation4], 32  }
 0x19e   :  { %601 = vsyncadd [#allocation4], 4294967264 }
 0x19f   :  { %320 = vsyncpa [#allocation3], 1 }
 0x1a0   :  { %321 = vsyncpa [#allocation6], 1 }
 0x1a1   :  { %322 = vsyncpa [#allocation4], 1 }

</bundles_post_ra>
